<compile_context>
chip_gen: v6e
topology: v6e:2x2x1
jax: 0.10.0
libtpu: 0.0.40
codegen_flags: <defaults>
</compile_context>

<pallas_src>
import jax
import jax.numpy as jnp
from jax.experimental import pallas as pl
from jax.experimental.pallas import tpu as pltpu

_LANES = 128


def _round_up(n: int, m: int) -> int:
    return ((n + m - 1) // m) * m


def _pick_batch_tile(B: int, batch_tile: int) -> int:
    """Tile rows: multiple of 16 (bf16 sublane packing) or exactly B."""
    tb = min(batch_tile, B)
    if tb < B:
        return max(16, (tb // 16) * 16)
    # One tile would cover the whole batch.  Split into >= 2 grid steps when
    # the batch is big enough so the "parallel" axis can use both v7x cores.
    if B >= 32:
        half = _round_up((B + 1) // 2, 16)
        if half < B:
            return half
    return B  # tiny batch: full-dim block is always legal


def policy_kernel(x_ref, w1_ref, b1_ref, w2_ref, b2_ref, o_ref):
    # fc1: cast activations to bf16 for the MXU (VPU has slack), f32 accumulate.
    x_bf = x_ref[...].astype(jnp.bfloat16)
    h = jnp.dot(x_bf, w1_ref[...], preferred_element_type=jnp.float32)
    h = jnp.maximum(h + b1_ref[...], 0.0)

    # fc2: bf16 MXU matmul over the lane-padded (128-wide) action dim.
    logits = jnp.dot(h.astype(w2_ref.dtype), w2_ref[...],
                     preferred_element_type=jnp.float32)
    # b2 holds -1e30 in padded lanes (>= action_dim): exp() underflows to 0
    # there, so the softmax denominator is unaffected by the padding.
    logits = logits + b2_ref[...]

    # numerically stable softmax over the padded, lane-dense action dim
    m = jnp.max(logits, axis=1, keepdims=True)
    e = jnp.exp(logits - m)
    denom = jnp.sum(e, axis=1, keepdims=True)

    # Store only the real action columns; exact f32 divide keeps row sums == 1.
    A = o_ref.shape[-1]
    o_ref[...] = (e[:, :A] / denom).astype(o_ref.dtype)


def policy_forward(x, w1, b1, w2, b2, *, batch_tile: int = 2048):
    """x: (B, S), w1: (S, H), b1: (H,), w2: (H, A), b2: (A,) -> (B, A) probs."""
    B, S = x.shape
    H = w1.shape[1]
    A = w2.shape[1]

    # Lane-dense padding of the action dim for the fc2 MXU matmul only.
    A_pad = max(_LANES, _round_up(A, _LANES))

    TB = _pick_batch_tile(B, batch_tile)
    grid = (pl.cdiv(B, TB),)

    # Weights are tiny (<~40 KB): one-time bf16 cast / pad in the wrapper.
    w1_b = w1.astype(jnp.bfloat16)
    b1_2d = b1.astype(jnp.float32).reshape(1, H)
    w2_p = jnp.zeros((H, A_pad), jnp.bfloat16).at[:, :A].set(
        w2.astype(jnp.bfloat16))
    b2_p = jnp.full((1, A_pad), -1e30, dtype=jnp.float32).at[0, :A].set(
        b2.astype(jnp.float32))

    cost = pl.CostEstimate(
        flops=2 * B * (S * H + H * A_pad),
        transcendentals=B * A_pad,                      # exp in the softmax
        bytes_accessed=(x.size * x.dtype.itemsize
                        + w1_b.size * 2 + w2_p.size * 2
                        + b1_2d.size * 4 + b2_p.size * 4
                        + B * A * 4),
    )

    return pl.pallas_call(
        policy_kernel,
        out_shape=jax.ShapeDtypeStruct((B, A), jnp.float32),
        grid=grid,
        in_specs=[
            pl.BlockSpec((TB, S), lambda i: (i, 0)),      # x: streamed per tile
            pl.BlockSpec((S, H), lambda i: (0, 0)),       # W1: VMEM-resident
            pl.BlockSpec((1, H), lambda i: (0, 0)),       # b1: VMEM-resident
            pl.BlockSpec((H, A_pad), lambda i: (0, 0)),   # W2: VMEM-resident
            pl.BlockSpec((1, A_pad), lambda i: (0, 0)),   # b2: VMEM-resident
        ],
        out_specs=pl.BlockSpec((TB, A), lambda i: (i, 0)),
        compiler_params=pltpu.CompilerParams(
            dimension_semantics=("parallel",),
            vmem_limit_bytes=32 * 1024 * 1024,
        ),
        cost_estimate=cost,
    )(x, w1_b, b1_2d, w2_p, b2_p)


def init_params(key, state_dim, action_dim, hidden_dim=128):
    """Deterministic init mimicking nn.Linear's uniform(-1/sqrt(fan_in), +)."""
    k1, k2, k3, k4 = jax.random.split(key, 4)
    bound1 = 1.0 / jnp.sqrt(state_dim)
    bound2 = 1.0 / jnp.sqrt(hidden_dim)
    w1 = jax.random.uniform(k1, (state_dim, hidden_dim), jnp.float32, -bound1, bound1)
    b1 = jax.random.uniform(k2, (hidden_dim,), jnp.float32, -bound1, bound1)
    w2 = jax.random.uniform(k3, (hidden_dim, action_dim), jnp.float32, -bound2, bound2)
    b2 = jax.random.uniform(k4, (action_dim,), jnp.float32, -bound2, bound2)
    return w1, b1, w2, b2


if __name__ == "__main__":
    key = jax.random.PRNGKey(0)
    kx, kp = jax.random.split(key)

    batch = 64
    state_dim = 16
    action_dim = 8
    hidden_dim = 128

    x = jax.random.normal(kx, (batch, state_dim), dtype=jnp.float32)
    w1, b1, w2, b2 = init_params(kp, state_dim, action_dim, hidden_dim)

    # B=64 splits into 2 parallel grid steps of 32 rows -> pipelined path.
    probs = jax.block_until_ready(policy_forward(x, w1, b1, w2, b2))

    # pure-JAX reference matching the kernel's bf16 MXU inputs / f32 accumulation
    xb = x.astype(jnp.bfloat16).astype(jnp.float32)
    w1b = w1.astype(jnp.bfloat16).astype(jnp.float32)
    w2b = w2.astype(jnp.bfloat16).astype(jnp.float32)
    h_ref = jnp.maximum(xb @ w1b + b1, 0.0)
    logits_ref = h_ref.astype(jnp.bfloat16).astype(jnp.float32) @ w2b + b2
    ref = jax.nn.softmax(logits_ref, axis=1)

    assert probs.shape == (batch, action_dim)
    assert jnp.allclose(probs, ref, atol=2e-3, rtol=2e-3)
    assert jnp.allclose(jnp.sum(probs, axis=1), 1.0, atol=1e-3)

    # Ragged-edge path: batch not a multiple of the tile (grid=3, last tile
    # partial; out-of-bounds rows are dropped on store).
    x2 = jax.random.normal(kx, (37, state_dim), dtype=jnp.float32)
    probs2 = jax.block_until_ready(
        policy_forward(x2, w1, b1, w2, b2, batch_tile=16))
    x2b = x2.astype(jnp.bfloat16).astype(jnp.float32)
    h2 = jnp.maximum(x2b @ w1b + b1, 0.0)
    ref2 = jax.nn.softmax(h2.astype(jnp.bfloat16).astype(jnp.float32) @ w2b + b2,
                          axis=1)
    assert probs2.shape == (37, action_dim)
    assert jnp.allclose(probs2, ref2, atol=2e-3, rtol=2e-3)
    assert jnp.allclose(jnp.sum(probs2, axis=1), 1.0, atol=1e-3)

    print("KERNEL_OK")
</pallas_src>

<mosaic_0001>
module attributes {stable_mosaic.version = 11 : i64} {
  func.func @policy_kernel(%arg0: i32, %arg1: memref<32x16xf32, #tpu.memory_space<vmem>>, %arg2: memref<16x128xbf16, #tpu.memory_space<vmem>>, %arg3: memref<1x128xf32, #tpu.memory_space<vmem>>, %arg4: memref<128x128xbf16, #tpu.memory_space<vmem>>, %arg5: memref<1x128xf32, #tpu.memory_space<vmem>>, %arg6: memref<32x8xf32, #tpu.memory_space<vmem>>) attributes {dimension_semantics = [#tpu.dimension_semantics<parallel>], iteration_bounds = array<i64: 2>, scalar_prefetch = 0 : i64, scratch_operands = 0 : i64, tpu.core_type = #tpu.core_type<tc>, window_params = [{transform_indices = @transform_0, window_bounds = array<i64: 32, 16>}, {pipeline_mode = #tpu.pipeline_mode<synchronous>, transform_indices = @transform_1, window_bounds = array<i64: 16, 128>}, {pipeline_mode = #tpu.pipeline_mode<synchronous>, transform_indices = @transform_2, window_bounds = array<i64: 1, 128>}, {pipeline_mode = #tpu.pipeline_mode<synchronous>, transform_indices = @transform_3, window_bounds = array<i64: 128, 128>}, {pipeline_mode = #tpu.pipeline_mode<synchronous>, transform_indices = @transform_4, window_bounds = array<i64: 1, 128>}, {transform_indices = @transform_5, window_bounds = array<i64: 32, 8>}]} {
    %c0 = arith.constant 0 : index
    %c0_0 = arith.constant 0 : index
    %0 = vector.load %arg1[%c0, %c0_0] : memref<32x16xf32, #tpu.memory_space<vmem>>, vector<32x16xf32>
    %1 = arith.truncf %0 : vector<32x16xf32> to vector<32x16xbf16>
    %c0_1 = arith.constant 0 : index
    %c0_2 = arith.constant 0 : index
    %2 = vector.load %arg2[%c0_1, %c0_2] : memref<16x128xbf16, #tpu.memory_space<vmem>>, vector<16x128xbf16>
    %cst = arith.constant dense<0.000000e+00> : vector<32x128xf32>
    %3 = tpu.matmul %1, %2, %cst {dimension_numbers = #tpu.dot_dimension_numbers<[1], [0], [0], [1], [0, 0, 1, 1], [], []>} : vector<32x16xbf16>, vector<16x128xbf16>, vector<32x128xf32> -> vector<32x128xf32>
    %c0_3 = arith.constant 0 : index
    %c0_4 = arith.constant 0 : index
    %4 = vector.load %arg3[%c0_3, %c0_4] : memref<1x128xf32, #tpu.memory_space<vmem>>, vector<1x128xf32>
    %5 = vector.broadcast %4 : vector<1x128xf32> to vector<32x128xf32>
    %6 = arith.addf %3, %5 : vector<32x128xf32>
    %cst_5 = arith.constant 0.000000e+00 : f32
    %7 = vector.broadcast %cst_5 : f32 to vector<32x128xf32>
    %8 = arith.maximumf %6, %7 : vector<32x128xf32>
    %9 = arith.truncf %8 : vector<32x128xf32> to vector<32x128xbf16>
    %c0_6 = arith.constant 0 : index
    %c0_7 = arith.constant 0 : index
    %10 = vector.load %arg4[%c0_6, %c0_7] : memref<128x128xbf16, #tpu.memory_space<vmem>>, vector<128x128xbf16>
    %cst_8 = arith.constant dense<0.000000e+00> : vector<32x128xf32>
    %11 = tpu.matmul %9, %10, %cst_8 {dimension_numbers = #tpu.dot_dimension_numbers<[1], [0], [0], [1], [0, 0, 1, 1], [], []>} : vector<32x128xbf16>, vector<128x128xbf16>, vector<32x128xf32> -> vector<32x128xf32>
    %c0_9 = arith.constant 0 : index
    %c0_10 = arith.constant 0 : index
    %12 = vector.load %arg5[%c0_9, %c0_10] : memref<1x128xf32, #tpu.memory_space<vmem>>, vector<1x128xf32>
    %13 = vector.broadcast %12 : vector<1x128xf32> to vector<32x128xf32>
    %14 = arith.addf %11, %13 : vector<32x128xf32>
    %cst_11 = arith.constant dense<0xFF800000> : vector<32xf32>
    %15 = vector.multi_reduction <maximumf>, %14, %cst_11 [1] : vector<32x128xf32> to vector<32xf32>
    %16 = vector.shape_cast %15 : vector<32xf32> to vector<32x1xf32>
    %17 = vector.broadcast %16 : vector<32x1xf32> to vector<32x128xf32>
    %18 = arith.subf %14, %17 : vector<32x128xf32>
    %19 = math.exp %18 : vector<32x128xf32>
    %cst_12 = arith.constant dense<0.000000e+00> : vector<32xf32>
    %20 = vector.multi_reduction <add>, %19, %cst_12 [1] : vector<32x128xf32> to vector<32xf32>
    %21 = vector.shape_cast %20 : vector<32xf32> to vector<32x1xf32>
    %22 = vector.extract_strided_slice %19 {offsets = [0, 0], sizes = [32, 8], strides = [1, 1]} : vector<32x128xf32> to vector<32x8xf32>
    %23 = vector.broadcast %21 : vector<32x1xf32> to vector<32x8xf32>
    %24 = arith.divf %22, %23 : vector<32x8xf32>
    %c0_13 = arith.constant 0 : index
    %c0_14 = arith.constant 0 : index
    %25 = vector.load %arg6[%c0_13, %c0_14] : memref<32x8xf32, #tpu.memory_space<vmem>>, vector<32x8xf32>
    tpu.vector_store %arg6[%c0_13, %c0_14], %24 {strides = array<i32>} : memref<32x8xf32, #tpu.memory_space<vmem>>, vector<32x8xf32>,
    return
  }
  func.func @transform_0(%arg0: i32) -> (i32, i32) {
    %c0_i32 = arith.constant 0 : i32
    %c0_i32_0 = arith.constant 0 : i32
    return %arg0, %c0_i32 : i32, i32
  }
  func.func @transform_1(%arg0: i32) -> (i32, i32) {
    %c0_i32 = arith.constant 0 : i32
    %c0_i32_0 = arith.constant 0 : i32
    %c0_i32_1 = arith.constant 0 : i32
    return %c0_i32, %c0_i32_0 : i32, i32
  }
  func.func @transform_2(%arg0: i32) -> (i32, i32) {
    %c0_i32 = arith.constant 0 : i32
    %c0_i32_0 = arith.constant 0 : i32
    %c0_i32_1 = arith.constant 0 : i32
    return %c0_i32, %c0_i32_0 : i32, i32
  }
  func.func @transform_3(%arg0: i32) -> (i32, i32) {
    %c0_i32 = arith.constant 0 : i32
    %c0_i32_0 = arith.constant 0 : i32
    %c0_i32_1 = arith.constant 0 : i32
    return %c0_i32, %c0_i32_0 : i32, i32
  }
  func.func @transform_4(%arg0: i32) -> (i32, i32) {
    %c0_i32 = arith.constant 0 : i32
    %c0_i32_0 = arith.constant 0 : i32
    %c0_i32_1 = arith.constant 0 : i32
    return %c0_i32, %c0_i32_0 : i32, i32
  }
  func.func @transform_5(%arg0: i32) -> (i32, i32) {
    %c0_i32 = arith.constant 0 : i32
    %c0_i32_0 = arith.constant 0 : i32
    return %arg0, %c0_i32 : i32, i32
  }
}

</mosaic_0001>

<bundles_post_ra>
// kernel: tpu_custom_call.1
= control target key start
LH: loop header
LB: loop body
LE: loop exit
PB: predicated region body
PF: predicated region fallthrough
CT: control target
= control target key end

     0   :  { %s663_s18 = smov 0   ;;  %s720_s0 = inlined_call_operand.vmem [shape: f32[64,16], index: 0, kind: input, shape index: {}]   ;;  %s721_s1 = inlined_call_operand.vmem [shape: bf16[16,128], index: 1, kind: input, shape index: {}]   ;;  %s722_s2 = inlined_call_operand.vmem [shape: f32[1,128], index: 2, kind: input, shape index: {}]   ;;  %s723_s3 = inlined_call_operand.vmem [shape: bf16[128,128], index: 3, kind: input, shape index: {}]   ;;  %s724_s4 = inlined_call_operand.vmem [shape: f32[1,128], index: 4, kind: input, shape index: {}]   ;;  %s725_s5 = inlined_call_operand.vmem [shape: f32[64,8], index: 5, kind: output, shape index: {}]  }
   0x1 LB: > { %s529_s19 = sadd.s32 4294967295, %s631_s18   ;;  %p533_p0 = scmp.ge.s32.totalorder %s631_s18, 1  ;;  %s631_s18 = sphi %s663_s18, %s15_s18  }
   0x2   : > { %p188_p1 = scmp.lt.s32.totalorder %s631_s18, 3 }
   0x4   : > { %p189_p2 = pnand %p533_p0, %p188_p1 }
   0x5   : > { %s534_s22 = sshll.u32 (!%p189_p2), %s529_s19, 2 }
   0x6   : > { %192 = sbr.rel (%p189_p2) target bundleno = 740 (0x2e4), region = 40  ;;  %p217_p3 = scmp.lt.s32.totalorder (!%p189_p2), %s534_s22, 7 }
   0xb   : > { %v600_v0 = vld [vmem:[%s721_s1] sm:$0xff]   ;;  %v601_v1 = vld [vmem:[%s723_s3 + $0x38] sm:$0xff]   ;;  %s727_s22 = smov (!%p217_p3, %s534_s22), 7  ;;  %v602_v2 = vld [vmem:[%s723_s3 + $0x30] sm:$0xff]   ;;  %vm250_vm0 = vcmask 130048   ;;  %vm468_vm1 = vcmask 64512  }
   0xc   : > { %566 = vmatprep.subr.bf16.mxu0 %v600_v0  ;;  %572 = vmatprep.subr.bf16.mxu1 %v601_v1  ;;  %s535_s27 = sshll.u32 %s727_s22, 3  ;;  %v603_v3 = vld [vmem:[%s723_s3 + $0x28] sm:$0xff]   ;;  %v604_v10 = vld [vmem:[%s723_s3 + $0x20] sm:$0xff]   ;;  %v605_v11 = vld [vmem:[%s723_s3 + $0x18] sm:$0xff]  }
   0xd   : > { %567 = vmatpush3.bf16.msra.mxu0 %v600_v0  ;;  %573 = vmatpush3.bf16.msra.mxu1 %v601_v1  ;;  %s220_s30 = scalar_lea.vmem %s720_s0, %s535_s27  ;;  %v606_v12 = vld [vmem:[%s723_s3 + $0x10] sm:$0xff]   ;;  %v607_v13 = vld [vmem:[%s723_s3 + $0x8] sm:$0xff]   ;;  %v608_v14 = vld [vmem:[%s723_s3] sm:$0xff]   ;;  %s226_s26 = scalar_lea.vmem %s725_s5, %s535_s27 }
   0xe   : > { %574 = vmatprep.subr.bf16.mxu1 %v602_v2  ;;  %v229_v4 = vld [vmem:[%s220_s30] sm:$0xff]  ;;  %v230_v5 = vld [vmem:[%s220_s30 + $0x8] sm:$0xff]  ;;  %v231_v6 = vld [vmem:[%s220_s30 + $0x10] sm:$0xff] }
   0xf   : > { %v233_v7 = vpack.c.bf16 %v230_v5, %v229_v4  ;;  %v232_v8 = vld [vmem:[%s220_s30 + $0x18] sm:$0xff]  ;;  %v538_v17 = vld [vmem:[%s722_s2] ss:$0 sm:$0xff] }
  0x10   : > { %v234_v9 = vpack.c.bf16 %v232_v8, %v231_v6  ;;  %v542_v30 = vld [vmem:[%s724_s4] ss:$0 sm:$0xff] }
  0x11   : > { %575 = vmatpush3.bf16.msra.mxu1 %v602_v2  ;;  %568 = vmatprep.mubr.msk.bf16.mxu0 %vm250_vm0, %v233_v7 }
  0x12   : > { %576 = vmatprep.subr.bf16.mxu1 %v603_v3  ;;  %569 = vmatmul.mubr.msk.bf16.vlgmr.msra.gmra.mxu0 %vm250_vm0, %v234_v9 }
  0x15   : > { %577 = vmatpush3.bf16.msra.mxu1 %v603_v3 }
  0x16   : > { %578 = vmatprep.subr.bf16.mxu1 %v604_v10 }
  0x19   : > { %579 = vmatpush3.bf16.msra.mxu1 %v604_v10 }
  0x1a   : > { %580 = vmatprep.subr.bf16.mxu1 %v605_v11 }
  0x1d   : > { %581 = vmatpush3.bf16.msra.mxu1 %v605_v11 }
  0x1e   : > { %582 = vmatprep.subr.bf16.mxu1 %v606_v12 }
  0x21   : > { %583 = vmatpush3.bf16.msra.mxu1 %v606_v12 }
  0x22   : > { %584 = vmatprep.subr.bf16.mxu1 %v607_v13 }
  0x25   : > { %585 = vmatpush3.bf16.msra.mxu1 %v607_v13 }
  0x26   : > { %586 = vmatprep.subr.bf16.mxu1 %v608_v14 }
  0x29   : > { %587 = vmatpush3.bf16.msra.mxu1 %v608_v14 }
  0xd2   : > { %v570_v15 = vpop.f32.mrf.mxu0 }
  0xd3   : > { %v300_v21 = vadd.f32 %v570_v15, %v538_v17 }
  0xd4   : > { %v291_v16 = vpop.f32.mrf.mxu0 }
  0xd5   : > { %v292_v19 = vadd.f32 %v538_v17, %v291_v16  ;;  %v308_v27 = vmax.f32 %v300_v21, 0.0 }
  0xd6   : > { %v571_v18 = vpop.f32.mrf.mxu0 }
  0xd7   : > { %v303_v20 = vadd.f32 %v571_v18, %v538_v17  ;;  %v306_v25 = vmax.f32 %v292_v19, 0.0 }
  0xd8   : > { %v294_v22 = vpop.f32.mrf.mxu0 }
  0xd9   : > { %v295_v23 = vadd.f32 %v538_v17, %v294_v22  ;;  %v309_v24 = vmax.f32 %v303_v20, 0.0 }
  0xdb   : > { %v307_v26 = vmax.f32 %v295_v23, 0.0  ;;  %v311_v29 = vpack.c.bf16 %v309_v24, %v308_v27 }
  0xdd   : > { %v310_v28 = vpack.c.bf16 %v307_v26, %v306_v25 }
  0xdf   : > { %588 = vmatprep.mubr.bf16.mxu1 %v310_v28 }
  0xe0   : > { %589 = vmatmul.mubr.bf16.vlgmr.msra.gmra.mxu1 %v311_v29 }
 0x1a0   : > { %v590_v31 = vpop.f32.mrf.mxu1 }
 0x1a1   : > { %v426_v32 = vadd.f32 %v590_v31, %v542_v30 }
 0x1a2   : > { %v417_v33 = vpop.f32.mrf.mxu1 }
 0x1a3   : > { %v418_v34 = vadd.f32 %v542_v30, %v417_v33  ;;  %436 = vmax.xlane.f32.xlu1 %v426_v32 }
 0x1a4   : > { %v591_v35 = vpop.f32.mrf.mxu1 }
 0x1a5   : > { %v429_v36 = vadd.f32 %v591_v35, %v542_v30  ;;  %432 = vmax.xlane.f32.xlu0 %v418_v34 }
 0x1a6   : > { %v420_v37 = vpop.f32.mrf.mxu1 }
 0x1a7   : > { %v421_v38 = vadd.f32 %v542_v30, %v420_v37  ;;  %438 = vmax.xlane.f32.xlu1 %v429_v36 }
 0x1a9   : > { %434 = vmax.xlane.f32.xlu0 %v421_v38 }
 0x22c   : > { %v437_v39 = vpop.xlane.xlu1 %436 }
 0x22d   : > { %v442_v40 = vsub.f32 %v426_v32, %v437_v39 }
 0x22e   : > { %v433_v41 = vpop.xlane.xlu0 %432 }
 0x22f   : > { %v440_v42 = vsub.f32 %v418_v34, %v433_v41  ;;  %v448_v45 = vmul.f32 1.442695, %v442_v40 }
 0x230   : > { %v439_v43 = vpop.xlane.xlu1 %438 }
 0x231   : > { %v444_v44 = vmul.f32 1.442695, %v440_v42  ;;  %v443_v47 = vsub.f32 %v429_v36, %v439_v43 }
 0x232   : > { %v435_v46 = vpop.xlane.xlu0 %434 }
 0x233   : > { %609 = vpow2.f32 %v444_v44  ;;  %v441_v48 = vsub.f32 %v421_v38, %v435_v46  ;;  %v450_v50 = vmul.f32 1.442695, %v443_v47 }
 0x234   : > { %611 = vpow2.f32 %v448_v45 }
 0x235   : > { %v446_v49 = vmul.f32 1.442695, %v441_v48 }
 0x237   : > { %613 = vpow2.f32 %v446_v49 }
 0x238   : > { %615 = vpow2.f32 %v450_v50 }
 0x240   : > { %v610_v51 = vpop.eup %609 }
 0x241   : > { %452 = vadd.xlane.f32.xlu0 %v610_v51  ;;  %v612_v52 = vpop.eup %611 }
 0x244   : > { %v614_v53 = vpop.eup %613 }
 0x245   : > { %456 = vadd.xlane.f32.xlu0 %v612_v52  ;;  %454 = vadd.xlane.f32.xlu1 %v614_v53  ;;  %v616_v54 = vpop.eup %615 }
 0x249   : > { %458 = vadd.xlane.f32.xlu1 %v616_v54 }
 0x2ca   : > { %v453_v55 = vpop.xlane.xlu0 %452 }
 0x2cb   : > { %617 = vrcp.f32 %v453_v55 }
 0x2ce   : > { %v455_v56 = vpop.xlane.xlu1 %454  ;;  %v457_v57 = vpop.xlane.xlu0 %456 }
 0x2cf   : > { %619 = vrcp.f32 %v455_v56 }
 0x2d0   : > { %621 = vrcp.f32 %v457_v57 }
 0x2d2   : > { %v459_v58 = vpop.xlane.xlu1 %458 }
 0x2d3   : > { %623 = vrcp.f32 %v459_v58 }
 0x2d8   : > { %v618_v59 = vpop.eup %617 }
 0x2d9   : > { %v461_v60 = vmul.f32 %v618_v59, %v610_v51 }
 0x2db   : > { %469 = vst.msk [vmem:[%s226_s26] sm:$0xff] %vm468_vm1, %v461_v60 }
 0x2dc   : > { %v620_v61 = vpop.eup %619 }
 0x2dd   : > { %v622_v62 = vpop.eup %621  ;;  %v463_v63 = vmul.f32 %v620_v61, %v614_v53 }
 0x2de   : > { %v465_v0 = vmul.f32 %v622_v62, %v612_v52 }
 0x2df   : > { %470 = vst.msk [vmem:[%s226_s26 + $0x8] sm:$0xff] %vm468_vm1, %v463_v63 }
 0x2e0   : > { %v624_v1 = vpop.eup %623  ;;  %471 = vst.msk [vmem:[%s226_s26 + $0x10] sm:$0xff] %vm468_vm1, %v465_v0 }
 0x2e1   : > { %v467_v2 = vmul.f32 %v624_v1, %v616_v54 }
 0x2e3   : > { %472 = vst.msk [vmem:[%s226_s26 + $0x18] sm:$0xff] %vm468_vm1, %v467_v2 }
 0x2e4 PF: > { %s15_s18 = sadd.s32 1, %s631_s18  }
 0x2e5   : > { %p12_p4 = scmp.ge.s32.totalorder %s15_s18, 4  }
 0x2e7   :  { %14 = sbr.rel (!%p12_p4) target bundleno = 1 (0x1), region = 70 }

</bundles_post_ra>
